<compile_context>
chip_gen: v6e
topology: v6e:2x2x1
jax: 0.10.0
libtpu: 0.0.40
codegen_flags: <defaults>
</compile_context>

<pallas_src>
import jax
import jax.numpy as jnp
from jax.experimental import pallas as pl
from jax.experimental.pallas import tpu as pltpu


# ----------------------------- kernel factory --------------------------------
def _make_kernel(latent_size, bias_segments):
    """bias_segments: six (offset, length) pairs into the packed bias array."""
    (o_eb1, n_eb1), (o_eb2, n_eb2), (o_eb3, n_eb3), \
        (o_db1, n_db1), (o_db2, n_db2), (o_db3, n_db3) = bias_segments

    def kernel(x_ref, eps_ref,
               ew1_ref, ew2_ref, ew3_ref, dw1_ref, dw2_ref, dw3_ref,
               b_ref, out_ref, enc_ref):
        # Static, sublane-aligned slices of the packed bias array (each (F, 1)).
        eb1 = b_ref[o_eb1:o_eb1 + n_eb1, :]
        eb2 = b_ref[o_eb2:o_eb2 + n_eb2, :]
        eb3 = b_ref[o_eb3:o_eb3 + n_eb3, :]
        db1 = b_ref[o_db1:o_db1 + n_db1, :]
        db2 = b_ref[o_db2:o_db2 + n_db2, :]
        db3 = b_ref[o_db3:o_db3 + n_db3, :]

        # ---- encoder: Linear -> ReLU -> Linear -> ReLU -> Linear (2L head) ----
        # Feature-major: y = W @ x, activations are (features, TB).
        x = x_ref[...].astype(jnp.bfloat16)                                  # (In, TB)
        h = jnp.dot(ew1_ref[...], x, preferred_element_type=jnp.float32) + eb1
        h = jnp.maximum(h, 0.0).astype(jnp.bfloat16)
        h = jnp.dot(ew2_ref[...], h, preferred_element_type=jnp.float32) + eb2
        h = jnp.maximum(h, 0.0).astype(jnp.bfloat16)

        enc = jnp.dot(ew3_ref[...], h, preferred_element_type=jnp.float32) + eb3  # (2L, TB)
        mu = enc[:latent_size, :]           # sublane-aligned static slices
        log_var = enc[latent_size:, :]

        # ---- reparameterize: z = mu + eps * exp(0.5 * log_var)  (f32) ----
        z = (mu + eps_ref[...] * jnp.exp(0.5 * log_var)).astype(jnp.bfloat16)

        # ---- decoder: Linear -> ReLU -> Linear -> ReLU -> Linear -> Tanh ----
        d = jnp.dot(dw1_ref[...], z, preferred_element_type=jnp.float32) + db1
        d = jnp.maximum(d, 0.0).astype(jnp.bfloat16)
        d = jnp.dot(dw2_ref[...], d, preferred_element_type=jnp.float32) + db2
        d = jnp.maximum(d, 0.0).astype(jnp.bfloat16)
        d = jnp.dot(dw3_ref[...], d, preferred_element_type=jnp.float32) + db3

        out_ref[...] = jnp.tanh(d)          # (Out, TB) lane-dense store
        enc_ref[...] = enc                  # (2L, TB) lane-dense store

    return kernel


# ------------------------------- helpers --------------------------------------
def _pick_tile(batch):
    """Lane-axis batch tile: multiple of 128, >=2 tiles when batch > 128."""
    if batch <= 128:
        return 128
    half = -(-batch // 2)                 # cdiv(batch, 2) -> at least 2 tiles (v7x dual TC)
    tb = -(-half // 128) * 128            # round up to multiple of 128
    return min(tb, 1024)                  # cap per-tile slab size


def _pack_biases(biases):
    """Concatenate (F, 1) biases along the sublane axis, padding each segment
    to a multiple of 8 so every in-kernel static slice is sublane-aligned."""
    segs, segments, off = [], [], 0
    for b in biases:
        n = b.shape[0]
        pad = (-n) % 8
        segs.append(jnp.pad(b, ((0, pad), (0, 0))))
        segments.append((off, n))
        off += n + pad
    return jnp.concatenate(segs, axis=0), tuple(segments)


# ------------------------------- wrapper --------------------------------------
@jax.jit
def vae_forward(x, params, eps):
    """Full VAE forward in one pallas_call, gridded over lane-axis batch tiles.

    Weights / packed biases use constant index_maps (VMEM-resident across grid
    steps); only the transposed x / eps / output slabs are streamed per tile.
    """
    batch, input_size = x.shape
    latent_size = eps.shape[1]
    output_size = params["dw3"].shape[0]

    tb = _pick_tile(batch)
    grid_n = -(-batch // tb)
    padded = grid_n * tb
    pad = padded - batch

    # Feature-major (transposed, zero-padded) activation streams.
    x_t = jnp.pad(x, ((0, pad), (0, 0))).T        # (In, padded)
    eps_t = jnp.pad(eps, ((0, pad), (0, 0))).T    # (L,  padded)

    bias_packed, segments = _pack_biases(
        [params[n] for n in ("eb1", "eb2", "eb3", "db1", "db2", "db3")])

    kernel = _make_kernel(latent_size, segments)

    def stream_spec(feat):         # batch-streamed (feat, TB) lane-dense slab
        return pl.BlockSpec((feat, tb), lambda i: (0, i))

    def resident_spec(shape):      # VMEM-resident weight / bias block
        return pl.BlockSpec(shape, lambda i: (0, 0))

    weight_names = ("ew1", "ew2", "ew3", "dw1", "dw2", "dw3")
    in_specs = ([stream_spec(input_size), stream_spec(latent_size)]
                + [resident_spec(params[n].shape) for n in weight_names]
                + [resident_spec(bias_packed.shape)])

    out_shapes = (
        jax.ShapeDtypeStruct((output_size, padded), jnp.float32),       # image (T)
        jax.ShapeDtypeStruct((2 * latent_size, padded), jnp.float32),   # [mu; log_var] (T)
    )
    out_specs = (stream_spec(output_size), stream_spec(2 * latent_size))

    out_t, enc_t = pl.pallas_call(
        kernel,
        out_shape=out_shapes,
        grid_spec=pltpu.PrefetchScalarGridSpec(
            num_scalar_prefetch=0,
            grid=(grid_n,),
            in_specs=in_specs,
            out_specs=out_specs,
        ),
        compiler_params=pltpu.CompilerParams(
            dimension_semantics=("parallel",)),   # batch tiles across TCs (v7x)
    )(x_t, eps_t, *(params[n] for n in weight_names), bias_packed)

    # Back to the module's batch-major convention.
    out = out_t[:, :batch].T
    mu = enc_t[:latent_size, :batch].T
    log_var = enc_t[latent_size:, :batch].T
    return out, mu, log_var


# --------------------------- parameter init ----------------------------------
def init_params(key, input_size, encoder_hidden_size, latent_size,
                decoder_hidden_size, output_size):
    """nn.Linear-style init (uniform(-1/sqrt(fan_in), 1/sqrt(fan_in))).

    Weights are stored PyTorch-style as (out_features, in_features), cast to
    bf16 for MXU consumption; biases are f32 columns (out_features, 1).
    The (2*latent, hidden) encoder head stays merged (mu rows, then log_var
    rows, exactly matching encodings[:, :L] / encodings[:, L:]).
    """
    def linear(k, fan_in, fan_out):
        kw, kb = jax.random.split(k)
        bound = 1.0 / (fan_in ** 0.5)
        w = jax.random.uniform(kw, (fan_out, fan_in), jnp.float32, -bound, bound)
        b = jax.random.uniform(kb, (fan_out, 1), jnp.float32, -bound, bound)
        return w.astype(jnp.bfloat16), b

    keys = jax.random.split(key, 6)
    ew1, eb1 = linear(keys[0], input_size, encoder_hidden_size)
    ew2, eb2 = linear(keys[1], encoder_hidden_size, encoder_hidden_size)
    ew3, eb3 = linear(keys[2], encoder_hidden_size, latent_size * 2)
    dw1, db1 = linear(keys[3], latent_size, decoder_hidden_size)
    dw2, db2 = linear(keys[4], decoder_hidden_size, decoder_hidden_size)
    dw3, db3 = linear(keys[5], decoder_hidden_size, output_size)

    return dict(ew1=ew1, eb1=eb1, ew2=ew2, eb2=eb2, ew3=ew3, eb3=eb3,
                dw1=dw1, db1=db1, dw2=dw2, db2=db2, dw3=dw3, db3=db3)


# ----------------------------- pure-JAX reference -----------------------------
def vae_forward_ref(x, params, eps):
    """Mirrors the kernel's numerics: bf16 matmul operands, f32 accumulation."""
    def lin(a, w, b):
        return jnp.dot(a.astype(jnp.bfloat16), w.T,
                       preferred_element_type=jnp.float32) + b[:, 0]

    latent = eps.shape[1]
    h = jnp.maximum(lin(x, params["ew1"], params["eb1"]), 0.0)
    h = jnp.maximum(lin(h, params["ew2"], params["eb2"]), 0.0)
    enc = lin(h, params["ew3"], params["eb3"])
    mu, log_var = enc[:, :latent], enc[:, latent:]
    z = mu + eps * jnp.exp(0.5 * log_var)
    d = jnp.maximum(lin(z, params["dw1"], params["db1"]), 0.0)
    d = jnp.maximum(lin(d, params["dw2"], params["db2"]), 0.0)
    out = jnp.tanh(lin(d, params["dw3"], params["db3"]))
    return out, mu, log_var


if __name__ == "__main__":
    # Shapes consistent with the module's constructor signature.  batch=256
    # gives a 2-tile grid (TB=128), exercising v7x dual-TC sharding while
    # keeping tiles lane-dense.
    batch = 256
    input_size = 16           # one-hot class vector size
    encoder_hidden_size = 32
    latent_size = 8
    decoder_hidden_size = 32
    output_size = 16          # flattened "image" size

    key = jax.random.PRNGKey(0)
    k_params, k_x, k_eps = jax.random.split(key, 3)

    params = init_params(k_params, input_size, encoder_hidden_size,
                         latent_size, decoder_hidden_size, output_size)

    # One-hot style input (as used in train()/sample()).
    class_ids = jax.random.randint(k_x, (batch,), 0, input_size)
    x = jnp.eye(input_size, dtype=jnp.float32)[class_ids]

    # Deterministic stand-in for torch.randn_like(std).
    eps = jax.random.normal(k_eps, (batch, latent_size), dtype=jnp.float32)

    out, mu, log_var = vae_forward(x, params, eps)
    jax.block_until_ready((out, mu, log_var))

    # Correctness check against the pure-JAX reference (same bf16/f32 recipe).
    ref_out, ref_mu, ref_lv = vae_forward_ref(x, params, eps)
    assert out.shape == (batch, output_size)
    assert mu.shape == (batch, latent_size) and log_var.shape == (batch, latent_size)
    assert jnp.allclose(out, ref_out, atol=2e-4), "constructed_image mismatch"
    assert jnp.allclose(mu, ref_mu, atol=2e-4), "mu mismatch"
    assert jnp.allclose(log_var, ref_lv, atol=2e-4), "log_var mismatch"

    print("KERNEL_OK")
</pallas_src>

<mosaic_0001>
module attributes {stable_mosaic.version = 11 : i64} {
  func.func @kernel(%arg0: i32, %arg1: memref<16x128xf32, #tpu.memory_space<vmem>>, %arg2: memref<8x128xf32, #tpu.memory_space<vmem>>, %arg3: memref<32x16xbf16, #tpu.memory_space<vmem>>, %arg4: memref<32x32xbf16, #tpu.memory_space<vmem>>, %arg5: memref<16x32xbf16, #tpu.memory_space<vmem>>, %arg6: memref<32x8xbf16, #tpu.memory_space<vmem>>, %arg7: memref<32x32xbf16, #tpu.memory_space<vmem>>, %arg8: memref<16x32xbf16, #tpu.memory_space<vmem>>, %arg9: memref<160x1xf32, #tpu.memory_space<vmem>>, %arg10: memref<16x128xf32, #tpu.memory_space<vmem>>, %arg11: memref<16x128xf32, #tpu.memory_space<vmem>>) attributes {dimension_semantics = [#tpu.dimension_semantics<parallel>], iteration_bounds = array<i64: 2>, scalar_prefetch = 0 : i64, scratch_operands = 0 : i64, tpu.core_type = #tpu.core_type<tc>, window_params = [{transform_indices = @transform_0, window_bounds = array<i64: 16, 128>}, {transform_indices = @transform_1, window_bounds = array<i64: 8, 128>}, {pipeline_mode = #tpu.pipeline_mode<synchronous>, transform_indices = @transform_2, window_bounds = array<i64: 32, 16>}, {pipeline_mode = #tpu.pipeline_mode<synchronous>, transform_indices = @transform_3, window_bounds = array<i64: 32, 32>}, {pipeline_mode = #tpu.pipeline_mode<synchronous>, transform_indices = @transform_4, window_bounds = array<i64: 16, 32>}, {pipeline_mode = #tpu.pipeline_mode<synchronous>, transform_indices = @transform_5, window_bounds = array<i64: 32, 8>}, {pipeline_mode = #tpu.pipeline_mode<synchronous>, transform_indices = @transform_6, window_bounds = array<i64: 32, 32>}, {pipeline_mode = #tpu.pipeline_mode<synchronous>, transform_indices = @transform_7, window_bounds = array<i64: 16, 32>}, {pipeline_mode = #tpu.pipeline_mode<synchronous>, transform_indices = @transform_8, window_bounds = array<i64: 160, 1>}, {transform_indices = @transform_9, window_bounds = array<i64: 16, 128>}, {transform_indices = @transform_10, window_bounds = array<i64: 16, 128>}]} {
    %c0 = arith.constant 0 : index
    %c0_0 = arith.constant 0 : index
    %0 = vector.load %arg9[%c0, %c0_0] : memref<160x1xf32, #tpu.memory_space<vmem>>, vector<32x1xf32>
    %c32 = arith.constant 32 : index
    %c0_1 = arith.constant 0 : index
    %1 = vector.load %arg9[%c32, %c0_1] : memref<160x1xf32, #tpu.memory_space<vmem>>, vector<32x1xf32>
    %c64 = arith.constant 64 : index
    %c0_2 = arith.constant 0 : index
    %2 = vector.load %arg9[%c64, %c0_2] : memref<160x1xf32, #tpu.memory_space<vmem>>, vector<16x1xf32>
    %c80 = arith.constant 80 : index
    %c0_3 = arith.constant 0 : index
    %3 = vector.load %arg9[%c80, %c0_3] : memref<160x1xf32, #tpu.memory_space<vmem>>, vector<32x1xf32>
    %c112 = arith.constant 112 : index
    %c0_4 = arith.constant 0 : index
    %4 = vector.load %arg9[%c112, %c0_4] : memref<160x1xf32, #tpu.memory_space<vmem>>, vector<32x1xf32>
    %c144 = arith.constant 144 : index
    %c0_5 = arith.constant 0 : index
    %5 = vector.load %arg9[%c144, %c0_5] : memref<160x1xf32, #tpu.memory_space<vmem>>, vector<16x1xf32>
    %c0_6 = arith.constant 0 : index
    %c0_7 = arith.constant 0 : index
    %6 = vector.load %arg1[%c0_6, %c0_7] : memref<16x128xf32, #tpu.memory_space<vmem>>, vector<16x128xf32>
    %7 = arith.truncf %6 : vector<16x128xf32> to vector<16x128xbf16>
    %c0_8 = arith.constant 0 : index
    %c0_9 = arith.constant 0 : index
    %8 = vector.load %arg3[%c0_8, %c0_9] : memref<32x16xbf16, #tpu.memory_space<vmem>>, vector<32x16xbf16>
    %cst = arith.constant dense<0.000000e+00> : vector<32x128xf32>
    %9 = tpu.matmul %8, %7, %cst {dimension_numbers = #tpu.dot_dimension_numbers<[1], [0], [0], [1], [0, 0, 1, 1], [], []>} : vector<32x16xbf16>, vector<16x128xbf16>, vector<32x128xf32> -> vector<32x128xf32>
    %10 = vector.broadcast %0 : vector<32x1xf32> to vector<32x128xf32>
    %11 = arith.addf %9, %10 : vector<32x128xf32>
    %cst_10 = arith.constant 0.000000e+00 : f32
    %12 = vector.broadcast %cst_10 : f32 to vector<32x128xf32>
    %13 = arith.maximumf %11, %12 : vector<32x128xf32>
    %14 = arith.truncf %13 : vector<32x128xf32> to vector<32x128xbf16>
    %c0_11 = arith.constant 0 : index
    %c0_12 = arith.constant 0 : index
    %15 = vector.load %arg4[%c0_11, %c0_12] : memref<32x32xbf16, #tpu.memory_space<vmem>>, vector<32x32xbf16>
    %cst_13 = arith.constant dense<0.000000e+00> : vector<32x128xf32>
    %16 = tpu.matmul %15, %14, %cst_13 {dimension_numbers = #tpu.dot_dimension_numbers<[1], [0], [0], [1], [0, 0, 1, 1], [], []>} : vector<32x32xbf16>, vector<32x128xbf16>, vector<32x128xf32> -> vector<32x128xf32>
    %17 = vector.broadcast %1 : vector<32x1xf32> to vector<32x128xf32>
    %18 = arith.addf %16, %17 : vector<32x128xf32>
    %cst_14 = arith.constant 0.000000e+00 : f32
    %19 = vector.broadcast %cst_14 : f32 to vector<32x128xf32>
    %20 = arith.maximumf %18, %19 : vector<32x128xf32>
    %21 = arith.truncf %20 : vector<32x128xf32> to vector<32x128xbf16>
    %c0_15 = arith.constant 0 : index
    %c0_16 = arith.constant 0 : index
    %22 = vector.load %arg5[%c0_15, %c0_16] : memref<16x32xbf16, #tpu.memory_space<vmem>>, vector<16x32xbf16>
    %cst_17 = arith.constant dense<0.000000e+00> : vector<16x128xf32>
    %23 = tpu.matmul %22, %21, %cst_17 {dimension_numbers = #tpu.dot_dimension_numbers<[1], [0], [0], [1], [0, 0, 1, 1], [], []>} : vector<16x32xbf16>, vector<32x128xbf16>, vector<16x128xf32> -> vector<16x128xf32>
    %24 = vector.broadcast %2 : vector<16x1xf32> to vector<16x128xf32>
    %25 = arith.addf %23, %24 : vector<16x128xf32>
    %26 = vector.extract_strided_slice %25 {offsets = [0, 0], sizes = [8, 128], strides = [1, 1]} : vector<16x128xf32> to vector<8x128xf32>
    %27 = vector.extract_strided_slice %25 {offsets = [8, 0], sizes = [8, 128], strides = [1, 1]} : vector<16x128xf32> to vector<8x128xf32>
    %c0_18 = arith.constant 0 : index
    %c0_19 = arith.constant 0 : index
    %28 = vector.load %arg2[%c0_18, %c0_19] : memref<8x128xf32, #tpu.memory_space<vmem>>, vector<8x128xf32>
    %cst_20 = arith.constant 5.000000e-01 : f32
    %29 = vector.broadcast %cst_20 : f32 to vector<8x128xf32>
    %30 = arith.mulf %29, %27 : vector<8x128xf32>
    %31 = math.exp %30 : vector<8x128xf32>
    %32 = arith.mulf %28, %31 : vector<8x128xf32>
    %33 = arith.addf %26, %32 : vector<8x128xf32>
    %34 = arith.truncf %33 : vector<8x128xf32> to vector<8x128xbf16>
    %c0_21 = arith.constant 0 : index
    %c0_22 = arith.constant 0 : index
    %35 = vector.load %arg6[%c0_21, %c0_22] : memref<32x8xbf16, #tpu.memory_space<vmem>>, vector<32x8xbf16>
    %cst_23 = arith.constant dense<0.000000e+00> : vector<32x128xf32>
    %36 = tpu.matmul %35, %34, %cst_23 {dimension_numbers = #tpu.dot_dimension_numbers<[1], [0], [0], [1], [0, 0, 1, 1], [], []>} : vector<32x8xbf16>, vector<8x128xbf16>, vector<32x128xf32> -> vector<32x128xf32>
    %37 = vector.broadcast %3 : vector<32x1xf32> to vector<32x128xf32>
    %38 = arith.addf %36, %37 : vector<32x128xf32>
    %cst_24 = arith.constant 0.000000e+00 : f32
    %39 = vector.broadcast %cst_24 : f32 to vector<32x128xf32>
    %40 = arith.maximumf %38, %39 : vector<32x128xf32>
    %41 = arith.truncf %40 : vector<32x128xf32> to vector<32x128xbf16>
    %c0_25 = arith.constant 0 : index
    %c0_26 = arith.constant 0 : index
    %42 = vector.load %arg7[%c0_25, %c0_26] : memref<32x32xbf16, #tpu.memory_space<vmem>>, vector<32x32xbf16>
    %cst_27 = arith.constant dense<0.000000e+00> : vector<32x128xf32>
    %43 = tpu.matmul %42, %41, %cst_27 {dimension_numbers = #tpu.dot_dimension_numbers<[1], [0], [0], [1], [0, 0, 1, 1], [], []>} : vector<32x32xbf16>, vector<32x128xbf16>, vector<32x128xf32> -> vector<32x128xf32>
    %44 = vector.broadcast %4 : vector<32x1xf32> to vector<32x128xf32>
    %45 = arith.addf %43, %44 : vector<32x128xf32>
    %cst_28 = arith.constant 0.000000e+00 : f32
    %46 = vector.broadcast %cst_28 : f32 to vector<32x128xf32>
    %47 = arith.maximumf %45, %46 : vector<32x128xf32>
    %48 = arith.truncf %47 : vector<32x128xf32> to vector<32x128xbf16>
    %c0_29 = arith.constant 0 : index
    %c0_30 = arith.constant 0 : index
    %49 = vector.load %arg8[%c0_29, %c0_30] : memref<16x32xbf16, #tpu.memory_space<vmem>>, vector<16x32xbf16>
    %cst_31 = arith.constant dense<0.000000e+00> : vector<16x128xf32>
    %50 = tpu.matmul %49, %48, %cst_31 {dimension_numbers = #tpu.dot_dimension_numbers<[1], [0], [0], [1], [0, 0, 1, 1], [], []>} : vector<16x32xbf16>, vector<32x128xbf16>, vector<16x128xf32> -> vector<16x128xf32>
    %51 = vector.broadcast %5 : vector<16x1xf32> to vector<16x128xf32>
    %52 = arith.addf %50, %51 : vector<16x128xf32>
    %53 = math.tanh %52 : vector<16x128xf32>
    %c0_32 = arith.constant 0 : index
    %c0_33 = arith.constant 0 : index
    %54 = vector.load %arg10[%c0_32, %c0_33] : memref<16x128xf32, #tpu.memory_space<vmem>>, vector<16x128xf32>
    tpu.vector_store %arg10[%c0_32, %c0_33], %53 {strides = array<i32>} : memref<16x128xf32, #tpu.memory_space<vmem>>, vector<16x128xf32>,
    %c0_34 = arith.constant 0 : index
    %c0_35 = arith.constant 0 : index
    %55 = vector.load %arg11[%c0_34, %c0_35] : memref<16x128xf32, #tpu.memory_space<vmem>>, vector<16x128xf32>
    tpu.vector_store %arg11[%c0_34, %c0_35], %25 {strides = array<i32>} : memref<16x128xf32, #tpu.memory_space<vmem>>, vector<16x128xf32>,
    return
  }
  func.func @transform_0(%arg0: i32) -> (i32, i32) {
    %c0_i32 = arith.constant 0 : i32
    %c0_i32_0 = arith.constant 0 : i32
    return %c0_i32, %arg0 : i32, i32
  }
  func.func @transform_1(%arg0: i32) -> (i32, i32) {
    %c0_i32 = arith.constant 0 : i32
    %c0_i32_0 = arith.constant 0 : i32
    return %c0_i32, %arg0 : i32, i32
  }
  func.func @transform_2(%arg0: i32) -> (i32, i32) {
    %c0_i32 = arith.constant 0 : i32
    %c0_i32_0 = arith.constant 0 : i32
    %c0_i32_1 = arith.constant 0 : i32
    return %c0_i32, %c0_i32_0 : i32, i32
  }
  func.func @transform_3(%arg0: i32) -> (i32, i32) {
    %c0_i32 = arith.constant 0 : i32
    %c0_i32_0 = arith.constant 0 : i32
    %c0_i32_1 = arith.constant 0 : i32
    return %c0_i32, %c0_i32_0 : i32, i32
  }
  func.func @transform_4(%arg0: i32) -> (i32, i32) {
    %c0_i32 = arith.constant 0 : i32
    %c0_i32_0 = arith.constant 0 : i32
    %c0_i32_1 = arith.constant 0 : i32
    return %c0_i32, %c0_i32_0 : i32, i32
  }
  func.func @transform_5(%arg0: i32) -> (i32, i32) {
    %c0_i32 = arith.constant 0 : i32
    %c0_i32_0 = arith.constant 0 : i32
    %c0_i32_1 = arith.constant 0 : i32
    return %c0_i32, %c0_i32_0 : i32, i32
  }
  func.func @transform_6(%arg0: i32) -> (i32, i32) {
    %c0_i32 = arith.constant 0 : i32
    %c0_i32_0 = arith.constant 0 : i32
    %c0_i32_1 = arith.constant 0 : i32
    return %c0_i32, %c0_i32_0 : i32, i32
  }
  func.func @transform_7(%arg0: i32) -> (i32, i32) {
    %c0_i32 = arith.constant 0 : i32
    %c0_i32_0 = arith.constant 0 : i32
    %c0_i32_1 = arith.constant 0 : i32
    return %c0_i32, %c0_i32_0 : i32, i32
  }
  func.func @transform_8(%arg0: i32) -> (i32, i32) {
    %c0_i32 = arith.constant 0 : i32
    %c0_i32_0 = arith.constant 0 : i32
    %c0_i32_1 = arith.constant 0 : i32
    return %c0_i32, %c0_i32_0 : i32, i32
  }
  func.func @transform_9(%arg0: i32) -> (i32, i32) {
    %c0_i32 = arith.constant 0 : i32
    %c0_i32_0 = arith.constant 0 : i32
    return %c0_i32, %arg0 : i32, i32
  }
  func.func @transform_10(%arg0: i32) -> (i32, i32) {
    %c0_i32 = arith.constant 0 : i32
    %c0_i32_0 = arith.constant 0 : i32
    return %c0_i32, %arg0 : i32, i32
  }
}

</mosaic_0001>

<bundles_post_ra>
// kernel: vae_forward.1
= control target key start
LH: loop header
LB: loop body
LE: loop exit
PB: predicated region body
PF: predicated region fallthrough
CT: control target
= control target key end

     0   :  { %s1663_s0 = inlined_call_operand.vmem [shape: f32[16,256], index: 0, kind: input, shape index: {}]   ;;  %s1664_s1 = inlined_call_operand.vmem [shape: f32[8,256], index: 1, kind: input, shape index: {}]   ;;  %s1665_s2 = inlined_call_operand.vmem [shape: bf16[32,16], index: 2, kind: input, shape index: {}]   ;;  %s1666_s3 = inlined_call_operand.vmem [shape: bf16[32,32], index: 3, kind: input, shape index: {}]   ;;  %s1667_s4 = inlined_call_operand.vmem [shape: bf16[16,32], index: 4, kind: input, shape index: {}]   ;;  %s1668_s5 = inlined_call_operand.vmem [shape: bf16[32,8], index: 5, kind: input, shape index: {}]   ;;  %s1669_s6 = inlined_call_operand.vmem [shape: bf16[32,32], index: 6, kind: input, shape index: {}]   ;;  %s1670_s7 = inlined_call_operand.vmem [shape: bf16[16,32], index: 7, kind: input, shape index: {}]   ;;  %s1671_s8 = inlined_call_operand.vmem [shape: f32[160,1], index: 8, kind: input, shape index: {}]   ;;  %s1672_s9 = inlined_call_operand.hbm [shape: f32[16,256], index: 9, kind: output, shape index: {0}]   ;;  %s1673_s10 = inlined_call_operand.vmem [shape: f32[16,256], index: 10, kind: output, shape index: {1}]  }
   0x1   :  { %1675 = sst [smem:[#allocation7_spill]] %s1663_s0 }
   0x2   :  { %1676 = sst [smem:[#allocation8_spill]] %s1664_s1 }
   0x3   :  { %16 = vsyncpa [#allocation4], 0 }
   0x4   :  { %18 = vsyncpa [#allocation4 + $0x1], 0  ;;  %s1422_s13 = smov 0   ;;  %s1424_s14 = smov 0  }
   0x5   :  { %s1426_s15 = smov 0   ;;  %s1428_s16 = smov 0  }
   0x6 LB: > { %s1443_s17 = sadd.s32 4294967295, %s1358_s16   ;;  %s1134_s18 = sadd.s32 4294967294, %s1358_s16   ;;  %s1358_s16 = sphi %s1428_s16, %s1685_s16   ;;  %s1354_s15 = sphi %s1426_s15, %s1684_s15   ;;  %s1350_s14 = sphi %s1424_s14, %s1683_s14   ;;  %s1346_s13 = sphi %s1422_s13, %s1682_s13  }
   0x7   : > { %s1447_s19 = sadd.s32 1, %s1358_s16   ;;  %s31_s20 = sadd.s32 1, %s1354_s15 }
   0x8   : > { %s28_s21 = ssub.s32 %s1358_s16, %s1447_s19  ;;  %p38_p0 = scmp.ne.s32.totalorder %s1354_s15, %s1350_s14 }
   0x9   : > { %p29_p1 = scmp.eq.s32.totalorder %s28_s21, 0  ;;  %p39_p2 = scmp.eq.s32.totalorder %s1358_s16, 0 }
   0xa   : > { %p241_p3 = scmp.eq.s32.totalorder %s1443_s17, 1  ;;  %p246_p4 = scmp.ne.s32.totalorder %s1350_s14, %s1346_s13 }
   0xb   : > { %s1459_s22 = scalar_select %p29_p1, %s1354_s15, %s31_s20  }
   0xc   : > { %p40_p5 = por %p39_p2, %p38_p0  ;;  %p1461_p6 = por %p241_p3, %p38_p0 }
   0xd   : > { %p247_p7 = scmp.eq.s32.totalorder %s1134_s18, 1  ;;  %p1136_p9 = scmp.ge.s32.totalorder %s1358_s16, 2 }
   0xf   : > { %p1465_p8 = por %p247_p7, %p246_p4  ;;  %310 = sbr.rel (%p1136_p9) target bundleno = 31 (0x1f), region = 44 }
  0x14   : > { %313 = sbr.rel (!%p40_p5) target bundleno = 31 (0x1f), region = 48  ;;  %s315_s25 = sand.u32 (%p40_p5), 1, %s1354_s15  }
  0x15   : > { %s1138_s26 = sshll.u32 (%p40_p5), %s1358_s16, 3  ;;  %s1137_s27 = sshll.u32 (%p40_p5), %s315_s25, 4 }
  0x16   : > { %s1679_s0 = sld [smem:[#allocation7_spill]] (%p40_p5)  ;;  %s317_s11 = scalar_lea.vmem (%p40_p5), [#allocation2], %s1137_s27 }
  0x1c   : > { %s319_s30 = scalar_lea.vmem %s1679_s0, %s1138_s26 }
  0x1d   : > { %v350_v0 = vld [vmem:[%s319_s30] sm:$0xff]  ;;  %v352_v1 = vld [vmem:[%s319_s30 + $0x10] sm:$0xff] }
  0x1e   : > { %351 = vst [vmem:[%s317_s11] sm:$0xff] %v350_v0  ;;  %353 = vst [vmem:[%s317_s11 + $0x8] sm:$0xff] %v352_v1 }
  0x1f PF: > { %p1139_p10 = scmp.ge.s32.totalorder %s1358_s16, 1  ;;  %p365_p11 = scmp.lt.s32.totalorder %s1358_s16, 3 }
  0x21   : > { %p366_p12 = pnand %p1139_p10, %p365_p11 }
  0x22   : > { %s1674_s12 = sand.u32 (!%p366_p12), 1, %s1350_s14   ;;  %p417_p13 = scmp.lt.s32.totalorder (!%p366_p12), %s1443_s17, 1 }
  0x23   : > { %369 = sbr.rel (%p366_p12) target bundleno = 1348 (0x544), region = 90  ;;  %s1485_s21 = sshll.u32 (!%p366_p12), %s1674_s12, 4 }
  0x24   : > { %s374_s27 = scalar_lea.vmem (!%p366_p12), [#allocation2], %s1485_s21  ;;  %s1574_s26 = scalar_lea.vmem (!%p366_p12), [#allocation5], %s1485_s21 }
  0x25   : > { %s1680_s1 = sld [smem:[#allocation8_spill]] (!%p366_p12)  ;;  %s1166_s20 = sshll.u32 (!%p366_p12), %s1443_s17, 7 }
  0x26   : > { %s1363_s30 = smov (!%p366_p12), [#allocation3]  }
  0x27   : > { %s1302_s0 = sshll.u32 (!%p366_p12), %s1363_s30, 4  ;;  %s1303_s0 = int_to_ptr.vmem [resolvable:$false] %s1302_s0 }
  0x28   : > { %v1282_v2 = vld [vmem:[%s1665_s2] sm:$0xff]   ;;  %vm479_vm0 = vcmask 130048   ;;  %v424_v3 = vld [vmem:[%s1671_s8 + $0x10] sm:$0xff]  ;;  %v443_v5 = vld [vmem:[%s374_s27 + $0x8] sm:$0xff]  ;;  %v1360_v6 = vmov 0   ;;  %vm575_vm1 = vcmask 261120  }
  0x29   : > { %1192 = vmatprep.mubr.msk.bf16.mxu0 %vm479_vm0, %v1282_v2  ;;  %v442_v4 = vld [vmem:[%s374_s27] sm:$0xff]  ;;  %1280 = vset.pattern.permute.xlu0 %v1360_v6  ;;  %v425_v9 = vld [vmem:[%s1671_s8 + $0x18] sm:$0xff]  ;;  %v1283_v10 = vld [vmem:[%s1665_s2 + $0x8] sm:$0xff]   ;;  %v1361_v48 = vmov 0.0   ;;  %vm1362_vm2 = vmmov 0   ;;  %vm739_vm3 = vcmask 64512  }
  0x2a   : > { %1281 = vset.pattern.permute.xlu1 %v1360_v6  ;;  %v444_v7 = vpack.c.bf16 %v443_v5, %v442_v4  ;;  %461 = vperm.xlu0 %1280, %v424_v3   ;;  %v422_v8 = vld [vmem:[%s1671_s8] sm:$0xff]  ;;  %v423_v11 = vld [vmem:[%s1671_s8 + $0x8] sm:$0xff]  ;;  %v428_v12 = vld [vmem:[%s1671_s8 + $0x30] sm:$0xff]  ;;  %s418_s27 = scalar_select %p417_p13, %s1443_s17, 1  ;;  %vm746_vm4 = vcmask 1043456  }
  0x2b   : > { %451 = vperm.xlu1 %1281, %v422_v8   ;;  %v429_v13 = vld [vmem:[%s1671_s8 + $0x38] sm:$0xff]  ;;  %v426_v14 = vld [vmem:[%s1671_s8 + $0x20] sm:$0xff]  ;;  %v427_v15 = vld [vmem:[%s1671_s8 + $0x28] sm:$0xff] }
  0x2c   : > { %1190 = vmatprep.subr.bf16.mxu0 %v444_v7  ;;  %v431_v16 = vld [vmem:[%s1671_s8 + $0x48] sm:$0xff]  ;;  %v430_v17 = vld [vmem:[%s1671_s8 + $0x40] sm:$0xff]  ;;  %v432_v20 = vld [vmem:[%s1671_s8 + $0x50] sm:$0xff]  ;;  %s1143_s28 = sshll.u32 %s418_s27, 3  ;;  %s1610_s27 = scalar_lea.hbm %s1672_s9, %s1166_s20 }
  0x2d   : > { %1191 = vmatpush3.bf16.msra.mxu0 %v444_v7  ;;  %v434_v18 = vld [vmem:[%s1671_s8 + $0x60] sm:$0xff]  ;;  %v435_v19 = vld [vmem:[%s1671_s8 + $0x68] sm:$0xff]  ;;  %v433_v21 = vld [vmem:[%s1671_s8 + $0x58] sm:$0xff]  ;;  %s420_s11 = scalar_lea.vmem %s1680_s1, %s1143_s28  ;;  %s1681_s28 = sand.u32 1, %s1350_s14  }
  0x2e   : > { %466 = vperm.xlu0 %1280, %v425_v9   ;;  %v438_v22 = vld [vmem:[%s1671_s8 + $0x80] sm:$0xff]  ;;  %v439_v23 = vld [vmem:[%s1671_s8 + $0x88] sm:$0xff]  ;;  %v436_v24 = vld [vmem:[%s1671_s8 + $0x70] sm:$0xff]  ;;  %1204 = vmatprep.subr.bf16.mxu0 %v1361_v48  ;;  %s1614_s29 = scalar_lea.sflag [#allocation4], %s1681_s28  ;;  %s1304_s1 = scalar_lea.vmem %s1303_s0, 512 }
  0x2f   : > { %456 = vperm.xlu1 %1281, %v423_v11   ;;  %v437_v25 = vld [vmem:[%s1671_s8 + $0x78] sm:$0xff]  ;;  %v440_v26 = vld [vmem:[%s1671_s8 + $0x90] sm:$0xff]  ;;  %v1284_v28 = vld [vmem:[%s1666_s3] sm:$0xff]  }
  0x30   : > { %1193 = vmatmul.mubr.msk.bf16.vlgmr.msra.gmra.mxu0 %vm479_vm0, %v1283_v10  ;;  %v441_v27 = vld [vmem:[%s1671_s8 + $0x98] sm:$0xff]  ;;  %1200 = vmatprep.mubr.msk.bf16.mxu1 %vm575_vm1, %v1284_v28  ;;  %v1285_v47 = vld [vmem:[%s1666_s3 + $0x8] sm:$0xff]   ;;  %v1286_v3 = vld [vmem:[%s1667_s4] sm:$0xff]  }
  0x31   : > { %1208 = vmatprep.mubr.msk.bf16.mxu0 %vm1362_vm2, %v1361_v48  ;;  %v1287_v4 = vld [vmem:[%s1668_s5] sm:$0xff]  }
  0x32   : > { %557 = vperm.xlu0 %1280, %v428_v12  }
  0x33   : > { %562 = vperm.xlu1 %1281, %v429_v13  }
  0x36   : > { %547 = vperm.xlu0 %1280, %v426_v14  }
  0x37   : > { %552 = vperm.xlu1 %1281, %v427_v15   ;;  %v698_v15 = vld [vmem:[%s420_s11] sm:$0xff]  ;;  %s410_s11 = scalar_lea.vmem [#allocation3], %s1485_s21 }
  0x38   : > { %s984_s18 = sshll.u32 %s410_s11, 4  ;;  %s1605_s18 = int_to_ptr.vmem [resolvable:$true] %s984_s18 }
  0x39   : > { %s1298_s21 = scalar_lea.vmem %s1605_s18, 256  ;;  %p1305_p3 = scmp.lt.s32.totalorder %s1605_s18, %s1303_s0 }
  0x3a   : > { %646 = vperm.xlu0 %1280, %v431_v16   ;;  %p1299_p0 = scmp.ne.s32.totalorder %s1605_s18, %s1298_s21  ;;  %p1306_p4 = scmp.lt.s32.totalorder %s1304_s1, %s1298_s21 }
  0x3b   : > { %641 = vperm.xlu1 %1281, %v430_v17  }
  0x3c   : > { %p1300_p1 = pnand %p1299_p0, %p1461_p6  ;;  %p1307_p5 = por %p1306_p4, %p1305_p3 }
  0x3e   : > { %721 = vperm.xlu0 %1280, %v434_v18   ;;  %p1301_p2 = pneg %p1300_p1 }
  0x3f   : > { %726 = vperm.xlu1 %1281, %v435_v19  }
  0x40   : > { %p1308_p7 = pnand %p1307_p5, %p1301_p2 }
  0x42   : > { %711 = vperm.xlu0 %1280, %v432_v20  }
  0x43   : > { %716 = vperm.xlu1 %1281, %v433_v21   ;;  %v1288_v21 = vld [vmem:[%s1668_s5 + $0x8] sm:$0xff]  }
  0x46   : > { %821 = vperm.xlu0 %1280, %v438_v22   ;;  %v1289_v22 = vld [vmem:[%s1669_s6] sm:$0xff]  }
  0x47   : > { %826 = vperm.xlu1 %1281, %v439_v23  }
  0x4a   : > { %811 = vperm.xlu0 %1280, %v436_v24  }
  0x4b   : > { %816 = vperm.xlu1 %1281, %v437_v25  }
  0x4e   : > { %904 = vperm.xlu0 %1280, %v440_v26  }
  0x4f   : > { %909 = vperm.xlu1 %1281, %v441_v27  }
  0xa5   : > { %v462_v29 = vpop.permute.xlu0 %461 }
  0xa6   : > { %v452_v30 = vpop.permute.xlu1 %451 }
  0xa9   : > { %v467_v34 = vpop.permute.xlu0 %466 }
  0xaa   : > { %v457_v38 = vpop.permute.xlu1 %456 }
  0xad   : > { %v558_v49 = vpop.permute.xlu0 %557 }
  0xae   : > { %v563_v50 = vpop.permute.xlu1 %562 }
  0xb1   : > { %v548_v55 = vpop.permute.xlu0 %547 }
  0xb2   : > { %v553_v57 = vpop.permute.xlu1 %552 }
  0xb5   : > { %v647_v9 = vpop.permute.xlu0 %646 }
  0xb6   : > { %v642_v5 = vpop.permute.xlu1 %641 }
  0xb9   : > { %v722_v23 = vpop.permute.xlu0 %721 }
  0xba   : > { %v727_v24 = vpop.permute.xlu1 %726 }
  0xbd   : > { %v712_v28 = vpop.permute.xlu0 %711 }
  0xf0   : > { %v1194_v31 = vpop.f32.mrf.mxu0 }
  0xf1   : > { %v529_v33 = vadd.f32 %v1194_v31, %v462_v29 }
  0xf2   : > { %v520_v32 = vpop.f32.mrf.mxu0 }
  0xf3   : > { %v521_v36 = vadd.f32 %v520_v32, %v452_v30  ;;  %v537_v40 = vmax.f32 %v529_v33, 0.0  ;;  %v717_v32 = vpop.permute.xlu1 %716 }
  0xf4   : > { %v1195_v35 = vpop.f32.mrf.mxu0 }
  0xf5   : > { %v532_v37 = vadd.f32 %v1195_v35, %v467_v34  ;;  %v535_v43 = vmax.f32 %v521_v36, 0.0 }
  0xf6   : > { %v523_v39 = vpop.f32.mrf.mxu0 }
  0xf7   : > { %v538_v41 = vmax.f32 %v532_v37, 0.0  ;;  %v524_v42 = vadd.f32 %v523_v39, %v457_v38 }
  0xf9   : > { %v536_v44 = vmax.f32 %v524_v42, 0.0  ;;  %v540_v45 = vpack.c.bf16 %v538_v41, %v537_v40  ;;  %v1290_v41 = vld [vmem:[%s1669_s6 + $0x8] sm:$0xff]   ;;  %v822_v42 = vpop.permute.xlu0 %821 }
  0xfb   : > { %v539_v46 = vpack.c.bf16 %v536_v44, %v535_v43  ;;  %1196 = vmatprep.subr.bf16.mxu1 %v540_v45  ;;  %v827_v43 = vpop.permute.xlu1 %826 }
  0xfc   : > { %1197 = vmatpush3.bf16.msra.mxu1 %v540_v45 }
  0xfd   : > { %1198 = vmatprep.subr.bf16.mxu1 %v539_v46 }
 0x100   : > { %1199 = vmatpush3.bf16.msra.mxu1 %v539_v46 }
 0x103   : > { %1201 = vmatmul.mubr.msk.bf16.vlgmr.msra.gmra.mxu1 %vm575_vm1, %v1285_v47 }
 0x104   : > { %1214 = vmatprep.mubr.msk.bf16.mxu1 %vm739_vm3, %v1287_v4 }
 0x1c3   : > { %v1202_v51 = vpop.f32.mrf.mxu1 }
 0x1c4   : > { %v625_v53 = vadd.f32 %v1202_v51, %v558_v49  ;;  %v812_v49 = vpop.permute.xlu0 %811  ;;  %v817_v51 = vpop.permute.xlu1 %816 }
 0x1c5   : > { %v616_v52 = vpop.f32.mrf.mxu1 }
 0x1c6   : > { %v633_v59 = vmax.f32 %v625_v53, 0.0  ;;  %v617_v60 = vadd.f32 %v616_v52, %v548_v55 }
 0x1c7   : > { %v1203_v54 = vpop.f32.mrf.mxu1 }
 0x1c8   : > { %v628_v56 = vadd.f32 %v1203_v54, %v563_v50  ;;  %v631_v1 = vmax.f32 %v617_v60, 0.0 }
 0x1c9   : > { %v619_v58 = vpop.f32.mrf.mxu1 }
 0x1ca   : > { %v634_v61 = vmax.f32 %v628_v56, 0.0  ;;  %v620_v62 = vadd.f32 %v619_v58, %v553_v57 }
 0x1cc   : > { %v636_v63 = vpack.c.bf16 %v634_v61, %v633_v59  ;;  %v632_v0 = vmax.f32 %v620_v62, 0.0  ;;  %v1291_v61 = vld [vmem:[%s1670_s7] sm:$0xff]   ;;  %v905_v62 = vpop.permute.xlu0 %904 }
 0x1ce   : > { %1205 = vmatpush3.bf16.msra.mxu0 %v636_v63  ;;  %v635_v2 = vpack.c.bf16 %v632_v0, %v631_v1 }
 0x1cf   : > { %1206 = vmatprep.subr.bf16.mxu0 %v1361_v48 }
 0x1d2   : > { %1207 = vmatpush3.bf16.msra.mxu0 %v635_v2  ;;  %v910_v2 = vpop.permute.xlu1 %909 }
 0x1d5   : > { %1209 = vmatmul.mubr.msk.bf16.vlgmr.msra.gmra.mxu0 %vm575_vm1, %v1286_v3 }
 0x1d6   : > { %1222 = vmatprep.mubr.msk.bf16.mxu0 %vm575_vm1, %v1289_v22 }
 0x295   : > { %v691_v6 = vpop.f32.mrf.mxu0 }
 0x296   : > { %v692_v7 = vadd.f32 %v691_v6, %v642_v5 }
 0x297   : > { %v1210_v8 = vpop.f32.mrf.mxu0 }
 0x298   : > { %965 = vst [vmem:[%s1574_s26] sm:$0xff] %v692_v7 }
 0x299   : > { %v694_v10 = vpop.f32.mrf.mxu0 }
 0x29a   : > { %v695_v11 = vadd.f32 %v694_v10, %v647_v9 }
 0x29b   : > { %v1211_v12 = vpop.f32.mrf.mxu0 }
 0x29c   : > { %v699_v13 = vmul.f32 0.5, %v695_v11  ;;  %966 = vst [vmem:[%s1574_s26 + $0x8] sm:$0xff] %v695_v11 }
 0x29e   : > { %v700_v14 = vmul.f32 1.442695, %v699_v13 }
 0x2a0   : > { %1292 = vpow2.f32 %v700_v14 }
 0x2ad   : > { %v1293_v16 = vpop.eup %1292 }
 0x2ae   : > { %v702_v17 = vmul.f32 %v1293_v16, %v698_v15 }
 0x2b0   : > { %v703_v18 = vadd.f32 %v702_v17, %v692_v7 }
 0x2b2   : > { %v704_v19 = vpack.c.bf16 %v703_v18, %v703_v18 }
 0x2b4   : > { %1234 = vmatprep.subr.msk.bf16.mxu1 %vm746_vm4, %v704_v19  ;;  %v748_v20 = vsel %vm746_vm4, %v704_v19, 0 }
 0x2b5   : > { %1213 = vmatpush3.bf16.msra.mxu1 %v748_v20 }
 0x2b6   : > { %1226 = vmatprep.subr.bf16.mxu1 %v1361_v48 }
 0x2b8   : > { %1215 = vmatmul.mubr.msk.bf16.vlgmr.msra.gmra.mxu1 %vm739_vm3, %v1288_v21 }
 0x2b9   : > { %1230 = vmatprep.mubr.msk.bf16.mxu1 %vm1362_vm2, %v1361_v48 }
 0x378   : > { %v1216_v25 = vpop.f32.mrf.mxu1 }
 0x379   : > { %v793_v27 = vadd.f32 %v1216_v25, %v722_v23 }
 0x37a   : > { %v784_v26 = vpop.f32.mrf.mxu1 }
 0x37b   : > { %v785_v30 = vadd.f32 %v784_v26, %v712_v28  ;;  %v801_v34 = vmax.f32 %v793_v27, 0.0 }
 0x37c   : > { %v1217_v29 = vpop.f32.mrf.mxu1 }
 0x37d   : > { %v796_v31 = vadd.f32 %v1217_v29, %v727_v24  ;;  %v799_v37 = vmax.f32 %v785_v30, 0.0 }
 0x37e   : > { %v787_v33 = vpop.f32.mrf.mxu1 }
 0x37f   : > { %v802_v35 = vmax.f32 %v796_v31, 0.0  ;;  %v788_v36 = vadd.f32 %v787_v33, %v717_v32 }
 0x381   : > { %v804_v38 = vpack.c.bf16 %v802_v35, %v801_v34  ;;  %v800_v39 = vmax.f32 %v788_v36, 0.0 }
 0x383   : > { %v803_v40 = vpack.c.bf16 %v800_v39, %v799_v37  ;;  %1218 = vmatprep.subr.bf16.mxu0 %v804_v38 }
 0x384   : > { %1219 = vmatpush3.bf16.msra.mxu0 %v804_v38 }
 0x385   : > { %1220 = vmatprep.subr.bf16.mxu0 %v803_v40 }
 0x388   : > { %1221 = vmatpush3.bf16.msra.mxu0 %v803_v40 }
 0x38b   : > { %1223 = vmatmul.mubr.msk.bf16.vlgmr.msra.gmra.mxu0 %vm575_vm1, %v1290_v41 }
 0x44b   : > { %v1224_v44 = vpop.f32.mrf.mxu0 }
 0x44c   : > { %v888_v46 = vadd.f32 %v1224_v44, %v822_v42 }
 0x44d   : > { %v879_v45 = vpop.f32.mrf.mxu0 }
 0x44e   : > { %v896_v53 = vmax.f32 %v888_v46, 0.0  ;;  %v880_v54 = vadd.f32 %v879_v45, %v812_v49 }
 0x44f   : > { %v1225_v47 = vpop.f32.mrf.mxu0 }
 0x450   : > { %v891_v50 = vadd.f32 %v1225_v47, %v827_v43  ;;  %v894_v59 = vmax.f32 %v880_v54, 0.0 }
 0x451   : > { %v882_v52 = vpop.f32.mrf.mxu0 }
 0x452   : > { %v897_v55 = vmax.f32 %v891_v50, 0.0  ;;  %v883_v56 = vadd.f32 %v882_v52, %v817_v51 }
 0x454   : > { %v899_v57 = vpack.c.bf16 %v897_v55, %v896_v53  ;;  %v895_v58 = vmax.f32 %v883_v56, 0.0 }
 0x456   : > { %1227 = vmatpush3.bf16.msra.mxu1 %v899_v57  ;;  %v898_v60 = vpack.c.bf16 %v895_v58, %v894_v59 }
 0x457   : > { %1228 = vmatprep.subr.bf16.mxu1 %v1361_v48 }
 0x45a   : > { %1229 = vmatpush3.bf16.msra.mxu1 %v898_v60 }
 0x45d   : > { %1231 = vmatmul.mubr.msk.bf16.vlgmr.msra.gmra.mxu1 %vm575_vm1, %v1291_v61 }
 0x51d   : > { %v954_v63 = vpop.f32.mrf.mxu1 }
 0x51e   : > { %v955_v0 = vadd.f32 %v954_v63, %v905_v62 }
 0x51f   : > { %v1232_v1 = vpop.f32.mrf.mxu1 }
 0x520   : > { %1294 = vtanh.f32 %v955_v0 }
 0x521   : > { %v957_v3 = vpop.f32.mrf.mxu1 }
 0x522   : > { %v958_v4 = vadd.f32 %v957_v3, %v910_v2 }
 0x523   : > { %v1233_v48 = vpop.f32.mrf.mxu1 }
 0x524   : > { %1296 = vtanh.f32 %v958_v4 }
 0x52d   : > { %v1295_v5 = vpop.eup %1294 }
 0x52e   : > { %963 = vst [vmem:[%s410_s11] sm:$0xff] %v1295_v5 }
 0x531   : > { %v1297_v6 = vpop.eup %1296 }
 0x532   : > { %964 = vst [vmem:[%s410_s11 + $0x8] sm:$0xff] %v1297_v6 }
 0x533   : > { %1311 = shalt.err (!%p1308_p7)
}
 0x534   : > { %s1312_s11 = scalar_lea.hbm %s1610_s27, 256  ;;  %s1316_s25 = scalar_lea.hbm %s1672_s9, 512 }
 0x535   : > { %p1313_p10 = scmp.ne.s32.totalorder %s1610_s27, %s1312_s11  ;;  %p1317_p13 = scmp.lt.s32.totalorder %s1610_s27, %s1672_s9 }
 0x536   : > { %p1318_p0 = scmp.lt.s32.totalorder %s1316_s25, %s1312_s11 }
 0x537   : > { %p1314_p11 = pnand %p1313_p10, %p1461_p6 }
 0x538   : > { %p1319_p1 = por %p1318_p0, %p1317_p13 }
 0x539   : > { %p1315_p12 = pneg %p1314_p11 }
 0x53b   : > { %p1320_p2 = pnand %p1319_p1, %p1315_p12 }
 0x53d   : > { %1323 = shalt.err (!%p1320_p2)
}
 0x53e   : > { %s1364_s0 = smov 128   ;;  %s1365_s1 = smov 256   ;;  %v1026_v7 = vld [vmem:[%s1574_s26] sm:$0xff] (%p1461_p6)  ;;  %v1028_v8 = vld [vmem:[%s1574_s26 + $0x8] sm:$0xff] (%p1461_p6) }
 0x53f   : > { %s1366_s21 = smov 8   ;;  %993 = sbr.rel (!%p1461_p6) target bundleno = 1348 (0x544), region = 102 }
 0x540   : > { %1235 = dma.vmem_to_hbm [thread:$0]  (%p1461_p6), %s1605_s18, 256, %s1610_s27, %s1614_s29, %s1364_s0, %s1365_s1, %s1366_s21  }
 0x541   : > { %s1167_s20 = sshll.u32 (%p1461_p6), %s1443_s17, 3 }
 0x542   : > { %s995_s25 = scalar_lea.vmem (%p1461_p6), %s1673_s10, %s1167_s20 }
 0x543   : > { %1027 = vst [vmem:[%s995_s25] sm:$0xff] (%p1461_p6), %v1026_v7  ;;  %1029 = vst [vmem:[%s995_s25 + $0x10] sm:$0xff] (%p1461_p6), %v1028_v8 }
 0x544 PF: > { %s1041_s18 = sand.u32 1, %s1346_s13   ;;  %p1238_p6 = pnand %p1136_p9, %p1465_p8 }
 0x545   : > { %s1042_s23 = scalar_lea.sflag [#allocation4], %s1041_s18 }
 0x546   : > { %p1239_p3 = pneg %p1238_p6 }
 0x548   : > { %1341 = dma.done.wait (%p1239_p3), %s1042_s23, 256  }
 0x549   : > { %1343 = vsyncadd (%p1239_p3), %s1042_s23, 4294967040  ;;  %p21_p4 = scmp.ge.s32.totalorder %s1447_s19, 4   ;;  %s1682_s13 = smov %s1350_s14 }
 0x54a   : > { %s1683_s14 = smov %s1354_s15  ;;  %s1684_s15 = smov %s1459_s22 }
 0x54b   : > { %s1685_s16 = smov %s1447_s19  ;;  %23 = sbr.rel (!%p21_p4) target bundleno = 6 (0x6), region = 187 }
 0x550   :  { %1054 = vsyncpa [#allocation4], 1 }
 0x551   :  { %1056 = vsyncpa [#allocation4 + $0x1], 1 }

</bundles_post_ra>
